<compile_context>
chip_gen: v6e
topology: v6e:2x2x1
jax: 0.10.0
libtpu: 0.0.40
codegen_flags: <defaults>
</compile_context>

<pallas_src>
import functools

import jax
import jax.numpy as jnp
from jax.experimental import pallas as pl
from jax.experimental.pallas import tpu as pltpu

GAMMA = 1.5
ALPHA = 0.25
LANES = 128
SUBLANES = 8
MAX_ROW_TILE = 4096          # 4096 x 128 f32 = 2 MiB per input tile
PAD_SENTINEL = -1.0e4        # finite (never -inf): exp underflows -> loss == 0


def _round_up(a, b):
    return (a + b - 1) // b * b


def _num_tensorcores():
    """Best-effort TensorCore count per JAX device (v7x-class=2, v5e/v6e=1)."""
    try:
        kind = jax.devices()[0].device_kind.lower()
    except Exception:  # pragma: no cover - defensive
        return 1
    if "v7" in kind or "7x" in kind or "ironwood" in kind:
        return 2
    return 1


def _focal_kernel(pred_ref, true_ref, out_ref, *, gamma, alpha, row_tile,
                  num_inner, rows, needs_row_mask):
    pcore = pl.program_id(0)   # per-TensorCore partial-sum axis
    j = pl.program_id(1)       # sequential reduction axis

    @pl.when(j == 0)
    def _():
        out_ref[...] = jnp.zeros_like(out_ref)

    x = pred_ref[...].astype(jnp.float32)
    y = true_ref[...].astype(jnp.float32)

    # Stable BCE-with-logits; e = exp(-|x|) is shared with the sigmoid below.
    e = jnp.exp(-jnp.abs(x))
    bce = jnp.maximum(x, 0.0) - x * y + jnp.log1p(e)

    # sigmoid(x) = 1/(1+e) for x >= 0, e/(1+e) for x < 0.  Exact reciprocal:
    # the EUP slot has slack (kernel is VALU/HBM bound), and the exact value
    # keeps p in [0, 1] so d below stays non-negative.
    inv = pl.reciprocal(1.0 + e, approx=False)
    p = jnp.where(x >= 0.0, inv, e * inv)

    # alpha_factor = y*alpha + (1-y)*(1-alpha)
    af = (1.0 - alpha) + y * (2.0 * alpha - 1.0)
    # 1 - p_t = 1 - (y*p + (1-y)*(1-p)) = p + y*(1 - 2p); clamp guards sqrt.
    d = jnp.maximum(p + y * (1.0 - 2.0 * p), 0.0)
    if gamma == 1.5:
        mod = d * jnp.sqrt(d)          # d**1.5 without an exp/log pow
    else:
        mod = d ** gamma
    loss = bce * af * mod

    def _accumulate(val):
        # (row_tile, 128) -> (8, 128) via cross-vreg VALU adds; the expensive
        # cross-lane/sublane collapse is deferred to the tiny wrapper reduce.
        partial = jnp.sum(val.reshape(row_tile // SUBLANES, SUBLANES, LANES),
                          axis=0)
        out_ref[...] += partial.reshape(1, SUBLANES, LANES)

    if needs_row_mask:
        # Lane-tail padding contributes exactly 0 (sentinel logit), so only
        # rows past the end of the real data need masking: the boundary
        # block's Pallas OOB-padded rows (garbage) and fully-overrun clamped
        # blocks (rows_left <= 0).  Interior blocks skip the mask entirely.
        blk = pcore * num_inner + j
        rows_left = rows - blk * row_tile

        @pl.when(rows_left >= row_tile)
        def _():                       # interior block: unmasked accumulate
            _accumulate(loss)

        @pl.when(rows_left < row_tile)
        def _():                       # boundary / overrun block: row mask
            r = jax.lax.broadcasted_iota(jnp.int32, loss.shape, 0)
            _accumulate(jnp.where(r < rows_left, loss, 0.0))
    else:
        _accumulate(loss)


def focal_loss(pred, true, gamma=GAMMA, alpha=ALPHA, reduction="mean"):
    """FocalLoss forward. pred/true: same shape (any), logits / targets."""
    assert pred.shape == true.shape
    n_valid = pred.size
    assert n_valid > 0

    # Flatten only (no dtype cast, no full-array copies); bf16 inputs are fine
    # (cast to f32 happens inside the kernel).
    flat_p = pred.reshape(-1)
    flat_t = true.reshape(-1)

    padded = _round_up(n_valid, LANES)
    if padded != n_valid:
        # Tiny (<128 elem) pad.  Sentinel logit + zero target makes the padded
        # tail contribute exactly 0, so no lane mask is needed in-kernel.
        flat_p = jnp.pad(flat_p, (0, padded - n_valid),
                         constant_values=PAD_SENTINEL)
        flat_t = jnp.pad(flat_t, (0, padded - n_valid))

    rows = padded // LANES
    row_tile = min(MAX_ROW_TILE, _round_up(rows, SUBLANES))
    nblocks = pl.cdiv(rows, row_tile)

    # One partial-sum slab per TensorCore: 2 only on dual-TC chips (v7x),
    # 1 on v5e/v6e -> single-TC chips never pay for a clamped overrun block
    # or a global mask.
    num_cores = _num_tensorcores()
    num_parallel = num_cores if (num_cores > 1 and nblocks >= num_cores) else 1
    num_inner = pl.cdiv(nblocks, num_parallel)

    # Row mask is only needed when the grid over-covers the real rows
    # (boundary block and/or clamped overrun blocks).
    needs_row_mask = (num_parallel * num_inner * row_tile) != rows

    p2 = flat_p.reshape(rows, LANES)
    t2 = flat_t.reshape(rows, LANES)

    def in_map(pc, j):
        blk = pc * num_inner + j
        # Clamp overrun blocks onto the last real block; their contribution is
        # zeroed in-kernel via the row bound (rows_left <= 0).
        return (jnp.minimum(blk, nblocks - 1), 0)

    kernel = functools.partial(
        _focal_kernel, gamma=gamma, alpha=alpha, row_tile=row_tile,
        num_inner=num_inner, rows=rows, needs_row_mask=needs_row_mask)

    if num_parallel > 1:
        dim_sem = (pltpu.CORE_PARALLEL, pltpu.ARBITRARY)
    else:
        dim_sem = ("arbitrary", "arbitrary")

    partials = pl.pallas_call(
        kernel,
        out_shape=jax.ShapeDtypeStruct((num_parallel, SUBLANES, LANES),
                                       jnp.float32),
        grid_spec=pltpu.PrefetchScalarGridSpec(
            num_scalar_prefetch=0,
            grid=(num_parallel, num_inner),
            in_specs=[
                pl.BlockSpec((row_tile, LANES), in_map),
                pl.BlockSpec((row_tile, LANES), in_map),
            ],
            out_specs=pl.BlockSpec((1, SUBLANES, LANES),
                                   lambda pc, j: (pc, 0, 0)),
        ),
        compiler_params=pltpu.CompilerParams(
            dimension_semantics=dim_sem,
            vmem_limit_bytes=32 * 1024 * 1024),
    )(p2, t2)

    total = jnp.sum(partials)
    if reduction == "mean":
        return total / jnp.float32(n_valid)
    elif reduction == "sum":
        return total
    else:
        # TODO(synk): reduction='none' (full elementwise output) not implemented.
        raise NotImplementedError("reduction='none' not supported")


def focal_loss_ref(pred, true, gamma=GAMMA, alpha=ALPHA):
    """Pure-JAX reference mirroring the PyTorch FocalLoss module (mean)."""
    x = pred.astype(jnp.float32)
    y = true.astype(jnp.float32)
    bce = jnp.maximum(x, 0.0) - x * y + jnp.log1p(jnp.exp(-jnp.abs(x)))
    p = jax.nn.sigmoid(x)
    p_t = y * p + (1.0 - y) * (1.0 - p)
    af = y * alpha + (1.0 - y) * (1.0 - alpha)
    loss = bce * af * (1.0 - p_t) ** gamma
    return loss.mean()


def _check(shape, k1, k2, tag):
    pred = jax.random.normal(k1, shape, dtype=jnp.float32) * 2.0
    true = (jax.random.uniform(k2, shape) > 0.7).astype(jnp.float32)
    out = focal_loss(pred, true)
    jax.block_until_ready(out)
    ref = focal_loss_ref(pred, true)
    assert jnp.allclose(out, ref, rtol=1e-4, atol=1e-7), (tag, out, ref)


if __name__ == "__main__":
    key = jax.random.PRNGKey(0)
    k1, k2, k3, k4, k5, k6 = jax.random.split(key, 6)

    # Primary case: NCHW (2, 4, 16, 16) -- exact multiple of 128, single
    # block, no masking at all.
    _check((2, 4, 16, 16), k1, k2, "nchw_small")

    # Ragged case: numel not a multiple of 128 -> sentinel lane pad + row-mask
    # on the (single, partial) boundary block.
    _check((3, 5, 7, 11), k3, k4, "ragged")

    # Larger case: multiple blocks -> unmasked interior block + row-masked
    # boundary block.
    _check((8, 8, 72, 128), k5, k6, "multiblock")

    print("KERNEL_OK")
</pallas_src>

<mosaic_0001>
module attributes {stable_mosaic.version = 11 : i64} {
  func.func @_focal_kernel(%arg0: i32, %arg1: i32, %arg2: memref<16x128xf32, #tpu.memory_space<vmem>>, %arg3: memref<16x128xf32, #tpu.memory_space<vmem>>, %arg4: memref<1x8x128xf32, #tpu.memory_space<vmem>>) attributes {dimension_semantics = [#tpu.dimension_semantics<arbitrary>, #tpu.dimension_semantics<arbitrary>], iteration_bounds = array<i64: 1, 1>, scalar_prefetch = 0 : i64, scratch_operands = 0 : i64, tpu.core_type = #tpu.core_type<tc>, window_params = [{transform_indices = @transform_0, window_bounds = array<i64: 16, 128>}, {transform_indices = @transform_1, window_bounds = array<i64: 16, 128>}, {transform_indices = @transform_2, window_bounds = array<i64: 1, 8, 128>}]} {
    %c0_i32 = arith.constant 0 : i32
    %0 = arith.cmpi eq, %arg1, %c0_i32 : i32
    %1 = arith.extui %0 : i1 to i32
    %c0_i32_0 = arith.constant 0 : i32
    %2 = arith.cmpi ne, %1, %c0_i32_0 : i32
    scf.if %2 {
      %cst_19 = arith.constant 0.000000e+00 : f32
      %44 = vector.broadcast %cst_19 : f32 to vector<1x8x128xf32>
      %c0_20 = arith.constant 0 : index
      %c0_21 = arith.constant 0 : index
      %c0_22 = arith.constant 0 : index
      %45 = vector.load %arg4[%c0_20, %c0_21, %c0_22] : memref<1x8x128xf32, #tpu.memory_space<vmem>>, vector<1x8x128xf32>
      tpu.vector_store %arg4[%c0_20, %c0_21, %c0_22], %44 {strides = array<i32>} : memref<1x8x128xf32, #tpu.memory_space<vmem>>, vector<1x8x128xf32>,
    } else {
    }
    %c0 = arith.constant 0 : index
    %c0_1 = arith.constant 0 : index
    %3 = vector.load %arg2[%c0, %c0_1] : memref<16x128xf32, #tpu.memory_space<vmem>>, vector<16x128xf32>
    %c0_2 = arith.constant 0 : index
    %c0_3 = arith.constant 0 : index
    %4 = vector.load %arg3[%c0_2, %c0_3] : memref<16x128xf32, #tpu.memory_space<vmem>>, vector<16x128xf32>
    %5 = math.absf %3 : vector<16x128xf32>
    %cst = arith.constant 0.000000e+00 : f32
    %6 = vector.broadcast %cst : f32 to vector<16x128xf32>
    %7 = arith.subf %6, %5 : vector<16x128xf32>
    %8 = math.exp %7 : vector<16x128xf32>
    %cst_4 = arith.constant 0.000000e+00 : f32
    %9 = vector.broadcast %cst_4 : f32 to vector<16x128xf32>
    %10 = arith.maximumf %3, %9 : vector<16x128xf32>
    %11 = arith.mulf %3, %4 : vector<16x128xf32>
    %12 = arith.subf %10, %11 : vector<16x128xf32>
    %13 = math.log1p %8 : vector<16x128xf32>
    %14 = arith.addf %12, %13 : vector<16x128xf32>
    %cst_5 = arith.constant 1.000000e+00 : f32
    %15 = vector.broadcast %cst_5 : f32 to vector<16x128xf32>
    %16 = arith.addf %15, %8 : vector<16x128xf32>
    %17 = tpu.reciprocal %16 : vector<16x128xf32> -> vector<16x128xf32>
    %cst_6 = arith.constant 0.000000e+00 : f32
    %18 = vector.broadcast %cst_6 : f32 to vector<16x128xf32>
    %19 = arith.cmpf oge, %3, %18 : vector<16x128xf32>
    %20 = arith.mulf %8, %17 : vector<16x128xf32>
    %21 = arith.select %19, %17, %20 : vector<16x128xi1>, vector<16x128xf32>
    %cst_7 = arith.constant -5.000000e-01 : f32
    %22 = vector.broadcast %cst_7 : f32 to vector<16x128xf32>
    %23 = arith.mulf %4, %22 : vector<16x128xf32>
    %cst_8 = arith.constant 7.500000e-01 : f32
    %24 = vector.broadcast %cst_8 : f32 to vector<16x128xf32>
    %25 = arith.addf %24, %23 : vector<16x128xf32>
    %cst_9 = arith.constant 2.000000e+00 : f32
    %26 = vector.broadcast %cst_9 : f32 to vector<16x128xf32>
    %27 = arith.mulf %26, %21 : vector<16x128xf32>
    %cst_10 = arith.constant 1.000000e+00 : f32
    %28 = vector.broadcast %cst_10 : f32 to vector<16x128xf32>
    %29 = arith.subf %28, %27 : vector<16x128xf32>
    %30 = arith.mulf %4, %29 : vector<16x128xf32>
    %31 = arith.addf %21, %30 : vector<16x128xf32>
    %cst_11 = arith.constant 0.000000e+00 : f32
    %32 = vector.broadcast %cst_11 : f32 to vector<16x128xf32>
    %33 = arith.maximumf %31, %32 : vector<16x128xf32>
    %34 = math.sqrt %33 : vector<16x128xf32>
    %35 = arith.mulf %33, %34 : vector<16x128xf32>
    %36 = arith.mulf %14, %25 : vector<16x128xf32>
    %37 = arith.mulf %36, %35 : vector<16x128xf32>
    %38 = vector.shape_cast %37 : vector<16x128xf32> to vector<2x8x128xf32>
    %cst_12 = arith.constant dense<0.000000e+00> : vector<8x128xf32>
    %39 = vector.multi_reduction <add>, %38, %cst_12 [0] : vector<2x8x128xf32> to vector<8x128xf32>
    %c0_13 = arith.constant 0 : index
    %c0_14 = arith.constant 0 : index
    %c0_15 = arith.constant 0 : index
    %40 = vector.load %arg4[%c0_13, %c0_14, %c0_15] : memref<1x8x128xf32, #tpu.memory_space<vmem>>, vector<1x8x128xf32>
    %41 = vector.shape_cast %39 : vector<8x128xf32> to vector<1x8x128xf32>
    %42 = arith.addf %40, %41 : vector<1x8x128xf32>
    %c0_16 = arith.constant 0 : index
    %c0_17 = arith.constant 0 : index
    %c0_18 = arith.constant 0 : index
    %43 = vector.load %arg4[%c0_16, %c0_17, %c0_18] : memref<1x8x128xf32, #tpu.memory_space<vmem>>, vector<1x8x128xf32>
    tpu.vector_store %arg4[%c0_16, %c0_17, %c0_18], %42 {strides = array<i32>} : memref<1x8x128xf32, #tpu.memory_space<vmem>>, vector<1x8x128xf32>,
    return
  }
  func.func @transform_0(%arg0: i32, %arg1: i32) -> (i32, i32) {
    %c1_i32 = arith.constant 1 : i32
    %0 = arith.muli %arg0, %c1_i32 : i32
    %1 = arith.addi %0, %arg1 : i32
    %c0_i32 = arith.constant 0 : i32
    %2 = arith.minsi %1, %c0_i32 : i32
    %c0_i32_0 = arith.constant 0 : i32
    %c0_i32_1 = arith.constant 0 : i32
    return %2, %c0_i32_0 : i32, i32
  }
  func.func @transform_1(%arg0: i32, %arg1: i32) -> (i32, i32) {
    %c1_i32 = arith.constant 1 : i32
    %0 = arith.muli %arg0, %c1_i32 : i32
    %1 = arith.addi %0, %arg1 : i32
    %c0_i32 = arith.constant 0 : i32
    %2 = arith.minsi %1, %c0_i32 : i32
    %c0_i32_0 = arith.constant 0 : i32
    %c0_i32_1 = arith.constant 0 : i32
    return %2, %c0_i32_0 : i32, i32
  }
  func.func @transform_2(%arg0: i32, %arg1: i32) -> (i32, i32, i32) {
    %c0_i32 = arith.constant 0 : i32
    %c0_i32_0 = arith.constant 0 : i32
    %c0_i32_1 = arith.constant 0 : i32
    return %arg0, %c0_i32, %c0_i32_0 : i32, i32, i32
  }
}

</mosaic_0001>

<bundles_post_ra>
// kernel: tpu_custom_call.1
= control target key start
LH: loop header
LB: loop body
LE: loop exit
PB: predicated region body
PF: predicated region fallthrough
CT: control target
= control target key end

     0   :  { %7 = vsyncpa [#allocation3], 0  ;;  %s288_s0 = inlined_call_operand.hbm [shape: f32[16,128], index: 0, kind: input, shape index: {}]   ;;  %s289_s1 = inlined_call_operand.hbm [shape: f32[16,128], index: 1, kind: input, shape index: {}]   ;;  %s290_s2 = inlined_call_operand.hbm [shape: f32[1,8,128], index: 2, kind: output, shape index: {}]  }
   0x1   :  { %8 = vsyncpa [#allocation6], 0 }
   0x2   :  { %9 = vsyncpa [#allocation4], 0  ;;  %s259_s9 = smov [#allocation2]  }
   0x3   :  { %s21_s10 = sshll.u32 %s259_s9, 4  ;;  %s22_s10 = int_to_ptr.vmem [resolvable:$true] %s21_s10 }
   0x4   :  { %s201_s11 = scalar_lea.vmem %s22_s10, 256  ;;  %p206_p1 = scmp.lt.s32.totalorder %s22_s10, %s22_s10 }
   0x5   :  { %p202_p0 = scmp.ne.s32.totalorder %s22_s10, %s201_s11  ;;  %p207_p2 = scmp.lt.s32.totalorder %s201_s11, %s201_s11 }
   0x7   :  { %p208_p3 = por %p207_p2, %p206_p1 }
   0x9   :  { %p209_p4 = pnand %p208_p3, %p202_p0 }
   0xb   :  { %212 = shalt.err (!%p209_p4)
}
   0xc   :  { %s260_s12 = smov 128   ;;  %s261_s13 = smov 8  }
   0xd   :  { %27 = dma.hbm_to_vmem [thread:$0]  %s288_s0, 256, %s22_s10, [#allocation3], %s260_s12, %s260_s12, %s261_s13  }
   0xe   :  { %s262_s16 = smov [#allocation5]  }
   0xf   :  { %s39_s17 = sshll.u32 %s262_s16, 4  ;;  %s40_s17 = int_to_ptr.vmem [resolvable:$true] %s39_s17 }
  0x10   :  { %s221_s18 = scalar_lea.vmem %s40_s17, 256  ;;  %p226_p6 = scmp.lt.s32.totalorder %s40_s17, %s40_s17 }
  0x11   :  { %p222_p5 = scmp.ne.s32.totalorder %s40_s17, %s221_s18  ;;  %p227_p7 = scmp.lt.s32.totalorder %s221_s18, %s221_s18 }
  0x13   :  { %p228_p8 = por %p227_p7, %p226_p6 }
  0x15   :  { %p229_p9 = pnand %p228_p8, %p222_p5 }
  0x17   :  { %232 = shalt.err (!%p229_p9)
}
  0x18   :  { %45 = dma.hbm_to_vmem [thread:$0]  %s289_s1, 256, %s40_s17, [#allocation6], %s260_s12, %s260_s12, %s261_s13  }
  0x19   :  { %253 = dma.done.wait [#allocation3], 256  }
  0x1a   :  { %254 = vsyncadd [#allocation3], 4294967040 }
  0x1b   :  { %255 = dma.done.wait [#allocation6], 256  }
  0x1c   :  { %256 = vsyncadd [#allocation6], 4294967040  ;;  %v65_v0 = vld [vmem:[#allocation2] sm:$0xff]  ;;  %v66_v1 = vld [vmem:[#allocation2 + $0x8] sm:$0xff]  ;;  %s263_s0 = smov [#allocation7]  }
  0x1d   :  { %v69_v2 = vand.u32 2147483647, %v65_v0  ;;  %v70_v3 = vand.u32 2147483647, %v66_v1  ;;  %vm107_vm0 = vcmp.ge.f32.partialorder %v65_v0, 0.0  ;;  %vm108_vm1 = vcmp.ge.f32.partialorder %v66_v1, 0.0 }
  0x1e   :  { %v67_v19 = vld [vmem:[#allocation5] sm:$0xff]  ;;  %v68_v21 = vld [vmem:[#allocation5 + $0x8] sm:$0xff]  ;;  %v77_v38 = vmax.f32 %v65_v0, 0.0  ;;  %v78_v40 = vmax.f32 %v66_v1, 0.0  ;;  %s157_s1 = sshll.u32 %s263_s0, 4  ;;  %s158_s1 = int_to_ptr.vmem [resolvable:$true] %s157_s1 }
  0x1f   :  { %v71_v4 = vsub.f32 0.0, %v69_v2  ;;  %v72_v5 = vsub.f32 0.0, %v70_v3  ;;  %v79_v39 = vmul.f32 %v67_v19, %v65_v0  ;;  %v80_v41 = vmul.f32 %v68_v21, %v66_v1  ;;  %s233_s21 = scalar_lea.vmem %s158_s1, 128  ;;  %p238_p11 = scmp.lt.s32.totalorder %s158_s1, %s158_s1 }
  0x20   :  { %v113_v47 = vmul.f32 -0.5, %v67_v19  ;;  %v114_v50 = vmul.f32 -0.5, %v68_v21  ;;  %p234_p10 = scmp.ne.s32.totalorder %s158_s1, %s233_s21  ;;  %p239_p12 = scmp.lt.s32.totalorder %s233_s21, %s233_s21 }
  0x21   :  { %v73_v6 = vmul.f32 1.442695, %v71_v4  ;;  %v75_v7 = vmul.f32 1.442695, %v72_v5  ;;  %v81_v46 = vsub.f32 %v77_v38, %v79_v39  ;;  %v82_v48 = vsub.f32 %v78_v40, %v80_v41 }
  0x22   :  { %v115_v53 = vadd.f32 0.75, %v113_v47  ;;  %v116_v56 = vadd.f32 0.75, %v114_v50  ;;  %p240_p13 = por %p239_p12, %p238_p11 }
  0x23   :  { %177 = vpow2.f32 %v73_v6 }
  0x24   :  { %179 = vpow2.f32 %v75_v7  ;;  %p241_p0 = pnand %p240_p13, %p234_p10 }
  0x30   :  { %v178_v8 = vpop.eup %177 }
  0x31   :  { %v180_v9 = vpop.eup %179  ;;  %v83_v10 = vadd.f32 1.0, %v178_v8  ;;  %v86_v27 = vmul.f32 -0.5, %v178_v8  ;;  %v89_v34 = vand.u32 2147483647, %v178_v8 }
  0x32   :  { %v92_v11 = vadd.f32 1.0, %v180_v9  ;;  %v95_v29 = vmul.f32 -0.5, %v180_v9  ;;  %v98_v37 = vand.u32 2147483647, %v180_v9 }
  0x33   :  { %181 = vrcp.f32 %v83_v10  ;;  %v87_v32 = vadd.f32 1.0, %v86_v27  ;;  %vm90_vm2 = vcmp.lt.f32.partialorder %v89_v34, 0.0004427343 }
  0x34   :  { %183 = vrcp.f32 %v92_v11  ;;  %v96_v35 = vadd.f32 1.0, %v95_v29  ;;  %vm99_vm3 = vcmp.lt.f32.partialorder %v98_v37, 0.0004427343 }
  0x35   :  { %185 = vlog2.f32 %v83_v10  ;;  %v88_v43 = vmul.f32 %v178_v8, %v87_v32 }
  0x36   :  { %187 = vlog2.f32 %v92_v11  ;;  %v97_v45 = vmul.f32 %v180_v9, %v96_v35 }
  0x40   :  { %v182_v12 = vpop.eup %181 }
  0x41   :  { %v184_v13 = vpop.eup %183  ;;  %v109_v14 = vmul.f32 %v182_v12, %v178_v8 }
  0x42   :  { %v110_v15 = vmul.f32 %v184_v13, %v180_v9  ;;  %v186_v33 = vpop.eup %185 }
  0x43   :  { %v111_v16 = vsel %vm107_vm0, %v182_v12, %v109_v14  ;;  %v188_v36 = vpop.eup %187  ;;  %v85_v42 = vmul.f32 0.6931472, %v186_v33 }
  0x44   :  { %v112_v17 = vsel %vm108_vm1, %v184_v13, %v110_v15  ;;  %v117_v18 = vmul.f32 2.0, %v111_v16  ;;  %v94_v44 = vmul.f32 0.6931472, %v188_v36 }
  0x45   :  { %v118_v20 = vmul.f32 2.0, %v112_v17  ;;  %v91_v49 = vsel %vm90_vm2, %v88_v43, %v85_v42 }
  0x46   :  { %v119_v22 = vsub.f32 1.0, %v117_v18  ;;  %v100_v51 = vsel %vm99_vm3, %v97_v45, %v94_v44  ;;  %v101_v52 = vadd.f32 %v91_v49, %v81_v46 }
  0x47   :  { %v120_v23 = vsub.f32 1.0, %v118_v20  ;;  %v102_v55 = vadd.f32 %v100_v51, %v82_v48 }
  0x48   :  { %v121_v24 = vmul.f32 %v119_v22, %v67_v19  ;;  %v143_v63 = vmul.f32 %v115_v53, %v101_v52 }
  0x49   :  { %v122_v25 = vmul.f32 %v120_v23, %v68_v21  ;;  %v144_v2 = vmul.f32 %v116_v56, %v102_v55 }
  0x4a   :  { %v123_v26 = vadd.f32 %v121_v24, %v111_v16 }
  0x4b   :  { %v124_v28 = vadd.f32 %v122_v25, %v112_v17 }
  0x4c   :  { %v125_v30 = vmax.f32 %v123_v26, 0.0 }
  0x4d   :  { %v126_v31 = vmax.f32 %v124_v28, 0.0 }
  0x4e   :  { %189 = vrsqrt.f32 %v125_v30  ;;  %vm129_vm4 = vcmp.eq.f32.partialorder %v125_v30, inf  ;;  %v132_v57 = vand.u32 2147483648, %v125_v30  ;;  %vm131_vm5 = vcmp.eq.f32.partialorder %v125_v30, 0.0 }
  0x4f   :  { %191 = vrsqrt.f32 %v126_v31  ;;  %vm136_vm6 = vcmp.eq.f32.partialorder %v126_v31, inf  ;;  %v139_v60 = vand.u32 2147483648, %v126_v31  ;;  %vm138_vm7 = vcmp.eq.f32.partialorder %v126_v31, 0.0 }
  0x5b   :  { %v190_v54 = vpop.eup %189 }
  0x5c   :  { %v192_v58 = vpop.eup %191  ;;  %v128_v59 = vmul.f32 %v190_v54, %v125_v30 }
  0x5d   :  { %v135_v61 = vmul.f32 %v192_v58, %v126_v31 }
  0x5e   :  { %v130_v62 = vsel %vm129_vm4, %v125_v30, %v128_v59 }
  0x5f   :  { %v133_v0 = vsel %vm131_vm5, %v132_v57, %v130_v62  ;;  %v137_v1 = vsel %vm136_vm6, %v126_v31, %v135_v61 }
  0x60   :  { %v140_v3 = vsel %vm138_vm7, %v139_v60, %v137_v1  ;;  %v141_v4 = vmul.f32 %v133_v0, %v125_v30 }
  0x61   :  { %v142_v5 = vmul.f32 %v140_v3, %v126_v31 }
  0x62   :  { %v145_v6 = vmul.f32 %v143_v63, %v141_v4 }
  0x63   :  { %v146_v7 = vmul.f32 %v144_v2, %v142_v5 }
  0x65   :  { %v147_v8 = vadd.f32 %v146_v7, %v145_v6 }
  0x67   :  { %150 = vst [vmem:[#allocation7] sm:$0xff] %v147_v8 }
  0x68   :  { %244 = shalt.err (!%p241_p0)
}
  0x69   :  { %160 = dma.vmem_to_hbm [thread:$0]  %s158_s1, 128, %s290_s2, [#allocation4]  }
  0x6a   :  { %257 = dma.done.wait [#allocation4], 128  }
  0x6b   :  { %258 = vsyncadd [#allocation4], 4294967168 }
  0x6c   :  { %164 = vsyncpa [#allocation3], 1 }
  0x6d   :  { %165 = vsyncpa [#allocation6], 1 }
  0x6e   :  { %166 = vsyncpa [#allocation4], 1 }

</bundles_post_ra>
